<compile_context>
chip_gen: v7x
topology: tpu7x:2x2x1
jax: 0.10.0
libtpu: 0.0.40
codegen_flags: <defaults>
</compile_context>

<pallas_src>
import functools

import jax
import jax.numpy as jnp
from jax import lax
from jax.experimental import pallas as pl
from jax.experimental.pallas import tpu as pltpu

BN_EPS = 1e-5
LANE = 128


def _round_up(n, m):
    return ((n + m - 1) // m) * m


def _pad2(a, rows, cols):
    return jnp.pad(a, ((0, rows - a.shape[0]), (0, cols - a.shape[1])))


# ---------------------------------------------------------------------------
# Kernel 1: Linear1 + accumulation of batch statistics (sum, sum of squares).
# Grid axis = batch tiles ("arbitrary": mean/istd outputs are accumulators).
# ---------------------------------------------------------------------------
def _linear1_stats_kernel(x_ref, w1_ref, b1_ref, h_ref, mean_ref, istd_ref,
                          *, valid_rows, tile_rows, eps):
    i = pl.program_id(0)

    # [TB, IN_P] @ [IN_P, H_P] + [1, H_P]  (all lane-dense, MXU)
    h = jnp.dot(x_ref[...], w1_ref[...], preferred_element_type=jnp.float32) + b1_ref[...]
    h_ref[...] = h  # full-lane (H_P = 128k) unmasked store

    # Mask out zero-padded batch rows so they don't contaminate the statistics.
    row = lax.broadcasted_iota(jnp.int32, h.shape, 0) + i * tile_rows
    valid = (row < valid_rows).astype(jnp.float32)
    hm = h * valid
    tile_sum = jnp.sum(hm, axis=0, keepdims=True)
    tile_sq = jnp.sum(hm * hm, axis=0, keepdims=True)

    @pl.when(i == 0)
    def _():
        mean_ref[...] = jnp.zeros_like(mean_ref)
        istd_ref[...] = jnp.zeros_like(istd_ref)

    mean_ref[...] += tile_sum
    istd_ref[...] += tile_sq

    # Finalize: convert (sum, sumsq) -> (mean, 1/sqrt(var + eps)) on the last tile.
    @pl.when(i == pl.num_programs(0) - 1)
    def _():
        inv_n = 1.0 / valid_rows
        m = mean_ref[...] * inv_n
        var = jnp.maximum(istd_ref[...] * inv_n - m * m, 0.0)  # biased (train-mode BN)
        mean_ref[...] = m
        istd_ref[...] = lax.rsqrt(var + eps)


# ---------------------------------------------------------------------------
# Kernel 2: BatchNorm (apply) + ReLU + Linear2. Grid axis = batch tiles ("parallel").
# ---------------------------------------------------------------------------
def _bn_relu_linear2_kernel(h_ref, mean_ref, istd_ref, gamma_ref, beta_ref,
                            w2_ref, b2_ref, o_ref):
    h_norm = (h_ref[...] - mean_ref[...]) * (istd_ref[...] * gamma_ref[...]) + beta_ref[...]
    h_act = jnp.maximum(h_norm, 0.0)
    out = jnp.dot(h_act, w2_ref[...], preferred_element_type=jnp.float32) + b2_ref[...]
    o_ref[...] = out.astype(o_ref.dtype)


def three_layer_perceptron(x, w1, b1, gamma, beta, w2, b2, *, batch_tile=256):
    """x: [B, IN] f32. w1: [IN, H], b1/gamma/beta: [1, H], w2: [H, C], b2: [1, C]."""
    B, IN = x.shape
    H = w1.shape[1]
    C = w2.shape[1]

    # Lane-dense padding of all feature dims; batch padded to a multiple of the tile.
    IN_P = _round_up(IN, LANE)
    H_P = _round_up(H, LANE)
    C_P = _round_up(C, LANE)
    # batch_tile=256 is VMEM-safe on all generations (v7x has only 64 MiB VMEM);
    # raise toward 512-1024 (and set vmem_limit_bytes) on v5e/v6e for big batches.
    TB = min(batch_tile, _round_up(B, 8))
    B_P = _round_up(B, TB)
    n_tiles = B_P // TB

    xp = _pad2(x, B_P, IN_P)
    w1p = _pad2(w1, IN_P, H_P)
    b1p = _pad2(b1, 1, H_P)
    gp = _pad2(gamma, 1, H_P)
    bp = _pad2(beta, 1, H_P)
    w2p = _pad2(w2, H_P, C_P)
    b2p = _pad2(b2, 1, C_P)

    # ---- pass 1: Linear1 + batch statistics --------------------------------
    h_pad, mean, istd = pl.pallas_call(
        functools.partial(_linear1_stats_kernel,
                          valid_rows=B, tile_rows=TB, eps=BN_EPS),
        out_shape=(
            jax.ShapeDtypeStruct((B_P, H_P), jnp.float32),
            jax.ShapeDtypeStruct((1, H_P), jnp.float32),
            jax.ShapeDtypeStruct((1, H_P), jnp.float32),
        ),
        grid=(n_tiles,),
        in_specs=[
            pl.BlockSpec((TB, IN_P), lambda i: (i, 0)),   # x tile, pipelined
            pl.BlockSpec((IN_P, H_P), lambda i: (0, 0)),  # w1 resident
            pl.BlockSpec((1, H_P), lambda i: (0, 0)),     # b1 resident
        ],
        out_specs=(
            pl.BlockSpec((TB, H_P), lambda i: (i, 0)),    # hidden activations
            pl.BlockSpec((1, H_P), lambda i: (0, 0)),     # mean accumulator
            pl.BlockSpec((1, H_P), lambda i: (0, 0)),     # istd accumulator
        ),
        compiler_params=pltpu.CompilerParams(
            dimension_semantics=("arbitrary",)),          # accumulators across batch tiles
    )(xp, w1p, b1p)

    # ---- pass 2: apply BN + ReLU + Linear2 ----------------------------------
    out_pad = pl.pallas_call(
        _bn_relu_linear2_kernel,
        out_shape=jax.ShapeDtypeStruct((B_P, C_P), x.dtype),
        grid=(n_tiles,),
        in_specs=[
            pl.BlockSpec((TB, H_P), lambda i: (i, 0)),    # h tile, pipelined
            pl.BlockSpec((1, H_P), lambda i: (0, 0)),     # mean resident
            pl.BlockSpec((1, H_P), lambda i: (0, 0)),     # istd resident
            pl.BlockSpec((1, H_P), lambda i: (0, 0)),     # gamma resident
            pl.BlockSpec((1, H_P), lambda i: (0, 0)),     # beta resident
            pl.BlockSpec((H_P, C_P), lambda i: (0, 0)),   # w2 resident
            pl.BlockSpec((1, C_P), lambda i: (0, 0)),     # b2 resident
        ],
        out_specs=pl.BlockSpec((TB, C_P), lambda i: (i, 0)),
        compiler_params=pltpu.CompilerParams(
            dimension_semantics=("parallel",)),           # batch tiles split across TCs (v7x)
    )(h_pad, mean, istd, gp, bp, w2p, b2p)

    return out_pad[:B, :C]


def reference(x, w1, b1, gamma, beta, w2, b2):
    h = x @ w1 + b1
    mean = jnp.mean(h, axis=0, keepdims=True)
    var = jnp.mean((h - mean) ** 2, axis=0, keepdims=True)
    h = (h - mean) / jnp.sqrt(var + BN_EPS) * gamma + beta
    h = jnp.maximum(h, 0.0)
    return h @ w2 + b2


if __name__ == "__main__":
    # Small shapes consistent with the module: batch=8, INPUT_size=16, hidden=32, class_num=4
    B, INPUT_SIZE, HIDDEN, CLASS_NUM = 8, 16, 32, 4

    key = jax.random.PRNGKey(0)
    kx, k1, kb1, k2, kb2 = jax.random.split(key, 5)

    x = jax.random.normal(kx, (B, INPUT_SIZE), dtype=jnp.float32)

    # Deterministic parameter init (uniform, roughly matching nn.Linear's fan-in scaling).
    lim1 = 1.0 / (INPUT_SIZE ** 0.5)
    w1 = jax.random.uniform(k1, (INPUT_SIZE, HIDDEN), minval=-lim1, maxval=lim1, dtype=jnp.float32)
    b1 = jax.random.uniform(kb1, (1, HIDDEN), minval=-lim1, maxval=lim1, dtype=jnp.float32)

    # BatchNorm1d default affine params: gamma=1, beta=0. (running stats not modeled here)
    gamma = jnp.ones((1, HIDDEN), dtype=jnp.float32)
    beta = jnp.zeros((1, HIDDEN), dtype=jnp.float32)

    lim2 = 1.0 / (HIDDEN ** 0.5)
    w2 = jax.random.uniform(k2, (HIDDEN, CLASS_NUM), minval=-lim2, maxval=lim2, dtype=jnp.float32)
    b2 = jax.random.uniform(kb2, (1, CLASS_NUM), minval=-lim2, maxval=lim2, dtype=jnp.float32)

    out = three_layer_perceptron(x, w1, b1, gamma, beta, w2, b2)
    out = jax.block_until_ready(out)

    ref = reference(x, w1, b1, gamma, beta, w2, b2)
    assert out.shape == (B, CLASS_NUM)
    assert jnp.allclose(out, ref, atol=1e-3, rtol=1e-3), \
        f"max abs err = {jnp.max(jnp.abs(out - ref))}"

    print("KERNEL_OK")
</pallas_src>

<mosaic_0001>
module attributes {stable_mosaic.version = 11 : i64} {
  func.func @_linear1_stats_kernel(%arg0: i32, %arg1: memref<8x128xf32, #tpu.memory_space<vmem>>, %arg2: memref<128x128xf32, #tpu.memory_space<vmem>>, %arg3: memref<1x128xf32, #tpu.memory_space<vmem>>, %arg4: memref<8x128xf32, #tpu.memory_space<vmem>>, %arg5: memref<1x128xf32, #tpu.memory_space<vmem>>, %arg6: memref<1x128xf32, #tpu.memory_space<vmem>>) attributes {dimension_semantics = [#tpu.dimension_semantics<arbitrary>], iteration_bounds = array<i64: 1>, scalar_prefetch = 0 : i64, scratch_operands = 0 : i64, tpu.core_type = #tpu.core_type<tc>, window_params = [{transform_indices = @transform_0, window_bounds = array<i64: 8, 128>}, {pipeline_mode = #tpu.pipeline_mode<synchronous>, transform_indices = @transform_1, window_bounds = array<i64: 128, 128>}, {pipeline_mode = #tpu.pipeline_mode<synchronous>, transform_indices = @transform_2, window_bounds = array<i64: 1, 128>}, {transform_indices = @transform_3, window_bounds = array<i64: 8, 128>}, {pipeline_mode = #tpu.pipeline_mode<synchronous>, transform_indices = @transform_4, window_bounds = array<i64: 1, 128>}, {pipeline_mode = #tpu.pipeline_mode<synchronous>, transform_indices = @transform_5, window_bounds = array<i64: 1, 128>}]} {
    %c0 = arith.constant 0 : index
    %c0_0 = arith.constant 0 : index
    %0 = vector.load %arg1[%c0, %c0_0] : memref<8x128xf32, #tpu.memory_space<vmem>>, vector<8x128xf32>
    %c0_1 = arith.constant 0 : index
    %c0_2 = arith.constant 0 : index
    %1 = vector.load %arg2[%c0_1, %c0_2] : memref<128x128xf32, #tpu.memory_space<vmem>>, vector<128x128xf32>
    %cst = arith.constant dense<0.000000e+00> : vector<8x128xf32>
    %2 = tpu.matmul %0, %1, %cst {dimension_numbers = #tpu.dot_dimension_numbers<[1], [0], [0], [1], [0, 0, 1, 1], [], []>} : vector<8x128xf32>, vector<128x128xf32>, vector<8x128xf32> -> vector<8x128xf32>
    %c0_3 = arith.constant 0 : index
    %c0_4 = arith.constant 0 : index
    %3 = vector.load %arg3[%c0_3, %c0_4] : memref<1x128xf32, #tpu.memory_space<vmem>>, vector<1x128xf32>
    %4 = vector.broadcast %3 : vector<1x128xf32> to vector<8x128xf32>
    %5 = arith.addf %2, %4 : vector<8x128xf32>
    %c0_5 = arith.constant 0 : index
    %c0_6 = arith.constant 0 : index
    %6 = vector.load %arg4[%c0_5, %c0_6] : memref<8x128xf32, #tpu.memory_space<vmem>>, vector<8x128xf32>
    tpu.vector_store %arg4[%c0_5, %c0_6], %5 {strides = array<i32>} : memref<8x128xf32, #tpu.memory_space<vmem>>, vector<8x128xf32>,
    %7 = tpu.iota {dimensions = array<i32: 0>} : vector<8x128xi32>
    %c8_i32 = arith.constant 8 : i32
    %8 = arith.muli %arg0, %c8_i32 : i32
    %9 = vector.broadcast %8 : i32 to vector<8x128xi32>
    %10 = arith.addi %7, %9 : vector<8x128xi32>
    %c8_i32_7 = arith.constant 8 : i32
    %11 = vector.broadcast %c8_i32_7 : i32 to vector<8x128xi32>
    %12 = arith.cmpi slt, %10, %11 : vector<8x128xi32>
    %13 = arith.extui %12 : vector<8x128xi1> to vector<8x128xi32>
    %14 = arith.sitofp %13 : vector<8x128xi32> to vector<8x128xf32>
    %15 = arith.mulf %5, %14 : vector<8x128xf32>
    %cst_8 = arith.constant dense<0.000000e+00> : vector<128xf32>
    %16 = vector.multi_reduction <add>, %15, %cst_8 [0] : vector<8x128xf32> to vector<128xf32>
    %17 = vector.shape_cast %16 : vector<128xf32> to vector<1x128xf32>
    %18 = arith.mulf %15, %15 : vector<8x128xf32>
    %cst_9 = arith.constant dense<0.000000e+00> : vector<128xf32>
    %19 = vector.multi_reduction <add>, %18, %cst_9 [0] : vector<8x128xf32> to vector<128xf32>
    %20 = vector.shape_cast %19 : vector<128xf32> to vector<1x128xf32>
    %c0_i32 = arith.constant 0 : i32
    %21 = arith.cmpi eq, %arg0, %c0_i32 : i32
    %22 = arith.extui %21 : i1 to i32
    %c0_i32_10 = arith.constant 0 : i32
    %23 = arith.cmpi ne, %22, %c0_i32_10 : i32
    scf.if %23 {
      %cst_21 = arith.constant 0.000000e+00 : f32
      %33 = vector.broadcast %cst_21 : f32 to vector<1x128xf32>
      %c0_22 = arith.constant 0 : index
      %c0_23 = arith.constant 0 : index
      %34 = vector.load %arg5[%c0_22, %c0_23] : memref<1x128xf32, #tpu.memory_space<vmem>>, vector<1x128xf32>
      tpu.vector_store %arg5[%c0_22, %c0_23], %33 {strides = array<i32>} : memref<1x128xf32, #tpu.memory_space<vmem>>, vector<1x128xf32>,
      %cst_24 = arith.constant 0.000000e+00 : f32
      %35 = vector.broadcast %cst_24 : f32 to vector<1x128xf32>
      %c0_25 = arith.constant 0 : index
      %c0_26 = arith.constant 0 : index
      %36 = vector.load %arg6[%c0_25, %c0_26] : memref<1x128xf32, #tpu.memory_space<vmem>>, vector<1x128xf32>
      tpu.vector_store %arg6[%c0_25, %c0_26], %35 {strides = array<i32>} : memref<1x128xf32, #tpu.memory_space<vmem>>, vector<1x128xf32>,
    } else {
    }
    %c0_11 = arith.constant 0 : index
    %c0_12 = arith.constant 0 : index
    %24 = vector.load %arg5[%c0_11, %c0_12] : memref<1x128xf32, #tpu.memory_space<vmem>>, vector<1x128xf32>
    %25 = arith.addf %24, %17 : vector<1x128xf32>
    %c0_13 = arith.constant 0 : index
    %c0_14 = arith.constant 0 : index
    %26 = vector.load %arg5[%c0_13, %c0_14] : memref<1x128xf32, #tpu.memory_space<vmem>>, vector<1x128xf32>
    tpu.vector_store %arg5[%c0_13, %c0_14], %25 {strides = array<i32>} : memref<1x128xf32, #tpu.memory_space<vmem>>, vector<1x128xf32>,
    %c0_15 = arith.constant 0 : index
    %c0_16 = arith.constant 0 : index
    %27 = vector.load %arg6[%c0_15, %c0_16] : memref<1x128xf32, #tpu.memory_space<vmem>>, vector<1x128xf32>
    %28 = arith.addf %27, %20 : vector<1x128xf32>
    %c0_17 = arith.constant 0 : index
    %c0_18 = arith.constant 0 : index
    %29 = vector.load %arg6[%c0_17, %c0_18] : memref<1x128xf32, #tpu.memory_space<vmem>>, vector<1x128xf32>
    tpu.vector_store %arg6[%c0_17, %c0_18], %28 {strides = array<i32>} : memref<1x128xf32, #tpu.memory_space<vmem>>, vector<1x128xf32>,
    %c0_i32_19 = arith.constant 0 : i32
    %30 = arith.cmpi eq, %arg0, %c0_i32_19 : i32
    %31 = arith.extui %30 : i1 to i32
    %c0_i32_20 = arith.constant 0 : i32
    %32 = arith.cmpi ne, %31, %c0_i32_20 : i32
    scf.if %32 {
      %c0_21 = arith.constant 0 : index
      %c0_22 = arith.constant 0 : index
      %33 = vector.load %arg5[%c0_21, %c0_22] : memref<1x128xf32, #tpu.memory_space<vmem>>, vector<1x128xf32>
      %cst_23 = arith.constant 1.250000e-01 : f32
      %34 = vector.broadcast %cst_23 : f32 to vector<1x128xf32>
      %35 = arith.mulf %33, %34 : vector<1x128xf32>
      %c0_24 = arith.constant 0 : index
      %c0_25 = arith.constant 0 : index
      %36 = vector.load %arg6[%c0_24, %c0_25] : memref<1x128xf32, #tpu.memory_space<vmem>>, vector<1x128xf32>
      %cst_26 = arith.constant 1.250000e-01 : f32
      %37 = vector.broadcast %cst_26 : f32 to vector<1x128xf32>
      %38 = arith.mulf %36, %37 : vector<1x128xf32>
      %39 = arith.mulf %35, %35 : vector<1x128xf32>
      %40 = arith.subf %38, %39 : vector<1x128xf32>
      %cst_27 = arith.constant 0.000000e+00 : f32
      %41 = vector.broadcast %cst_27 : f32 to vector<1x128xf32>
      %42 = arith.maximumf %40, %41 : vector<1x128xf32>
      %c0_28 = arith.constant 0 : index
      %c0_29 = arith.constant 0 : index
      %43 = vector.load %arg5[%c0_28, %c0_29] : memref<1x128xf32, #tpu.memory_space<vmem>>, vector<1x128xf32>
      tpu.vector_store %arg5[%c0_28, %c0_29], %35 {strides = array<i32>} : memref<1x128xf32, #tpu.memory_space<vmem>>, vector<1x128xf32>,
      %cst_30 = arith.constant 9.99999974E-6 : f32
      %44 = vector.broadcast %cst_30 : f32 to vector<1x128xf32>
      %45 = arith.addf %42, %44 : vector<1x128xf32>
      %46 = math.rsqrt %45 : vector<1x128xf32>
      %c0_31 = arith.constant 0 : index
      %c0_32 = arith.constant 0 : index
      %47 = vector.load %arg6[%c0_31, %c0_32] : memref<1x128xf32, #tpu.memory_space<vmem>>, vector<1x128xf32>
      tpu.vector_store %arg6[%c0_31, %c0_32], %46 {strides = array<i32>} : memref<1x128xf32, #tpu.memory_space<vmem>>, vector<1x128xf32>,
    } else {
    }
    return
  }
  func.func @transform_0(%arg0: i32) -> (i32, i32) {
    %c0_i32 = arith.constant 0 : i32
    %c0_i32_0 = arith.constant 0 : i32
    return %arg0, %c0_i32 : i32, i32
  }
  func.func @transform_1(%arg0: i32) -> (i32, i32) {
    %c0_i32 = arith.constant 0 : i32
    %c0_i32_0 = arith.constant 0 : i32
    %c0_i32_1 = arith.constant 0 : i32
    return %c0_i32, %c0_i32_0 : i32, i32
  }
  func.func @transform_2(%arg0: i32) -> (i32, i32) {
    %c0_i32 = arith.constant 0 : i32
    %c0_i32_0 = arith.constant 0 : i32
    %c0_i32_1 = arith.constant 0 : i32
    return %c0_i32, %c0_i32_0 : i32, i32
  }
  func.func @transform_3(%arg0: i32) -> (i32, i32) {
    %c0_i32 = arith.constant 0 : i32
    %c0_i32_0 = arith.constant 0 : i32
    return %arg0, %c0_i32 : i32, i32
  }
  func.func @transform_4(%arg0: i32) -> (i32, i32) {
    %c0_i32 = arith.constant 0 : i32
    %c0_i32_0 = arith.constant 0 : i32
    %c0_i32_1 = arith.constant 0 : i32
    return %c0_i32, %c0_i32_0 : i32, i32
  }
  func.func @transform_5(%arg0: i32) -> (i32, i32) {
    %c0_i32 = arith.constant 0 : i32
    %c0_i32_0 = arith.constant 0 : i32
    %c0_i32_1 = arith.constant 0 : i32
    return %c0_i32, %c0_i32_0 : i32, i32
  }
}

</mosaic_0001>

<bundles_post_ra>
// kernel: tpu_custom_call.1
= control target key start
LH: loop header
LB: loop body
LE: loop exit
PB: predicated region body
PF: predicated region fallthrough
CT: control target
= control target key end

     0   :  { %11 = vsyncpa [#allocation3], 0  ;;  %s548_s0 = inlined_call_operand.hbm [shape: f32[8,128], index: 0, kind: input, shape index: {}]   ;;  %s549_s1 = inlined_call_operand.hbm [shape: f32[128,128], index: 1, kind: input, shape index: {}]   ;;  %s550_s2 = inlined_call_operand.vmem [shape: f32[1,128], index: 2, kind: input, shape index: {}]   ;;  %s551_s3 = inlined_call_operand.hbm [shape: f32[8,128], index: 3, kind: output, shape index: {0}]   ;;  %s552_s4 = inlined_call_operand.hbm [shape: f32[1,128], index: 4, kind: output, shape index: {1}]   ;;  %s553_s5 = inlined_call_operand.hbm [shape: f32[1,128], index: 5, kind: output, shape index: {2}]  }
   0x1   :  { %12 = vsyncpa [#allocation6], 0 }
   0x2   :  { %13 = vsyncpa [#allocation4], 0 }
   0x3   :  { %14 = vsyncpa [#allocation9], 0  ;;  %s438_s18 = smov [#allocation2]   ;;  %s439_s20 = smov [#allocation5]  }
   0x4   :  { %s21_s19 = sshll.u32 %s438_s18, 4  ;;  %s30_s21 = sshll.u32 %s439_s20, 4  ;;  %s22_s19 = int_to_ptr.vmem [resolvable:$true] %s21_s19  ;;  %s478_s21 = int_to_ptr.vmem [resolvable:$true] %s30_s21 }
   0x5   :  { %s320_s24 = scalar_lea.hbm %s548_s0, 128 }
   0x6   :  { %p321_p0 = scmp.ne.s32.totalorder %s548_s0, %s320_s24  ;;  %p324_p1 = scmp.lt.u32.totalorder %s320_s24, %s548_s0 }
   0x8   :  { %p326_p2 = pnand %p324_p1, %p321_p0 }
   0xa   :  { %329 = shalt.err (!%p326_p2)
}
   0xb   :  { %s330_s29 = scalar_lea.vmem %s22_s19, 128  ;;  %p335_p4 = scmp.lt.s32.totalorder %s22_s19, %s22_s19 }
   0xc   :  { %p331_p3 = scmp.ne.s32.totalorder %s22_s19, %s330_s29  ;;  %p336_p5 = scmp.lt.s32.totalorder %s330_s29, %s330_s29 }
   0xe   :  { %p337_p6 = por %p336_p5, %p335_p4 }
  0x10   :  { %p338_p7 = pnand %p337_p6, %p331_p3 }
  0x12   :  { %341 = shalt.err (!%p338_p7)
}
  0x13   :  { %24 = dma.hbm_to_vmem [thread:$0]  %s548_s0, 128, %s22_s19, [#allocation3]  }
  0x14   :  { %s342_s9 = scalar_lea.hbm %s549_s1, 2048 }
  0x15   :  { %p343_p8 = scmp.ne.s32.totalorder %s549_s1, %s342_s9  ;;  %p346_p9 = scmp.lt.u32.totalorder %s342_s9, %s549_s1 }
  0x17   :  { %p348_p10 = pnand %p346_p9, %p343_p8 }
  0x19   :  { %351 = shalt.err (!%p348_p10)
}
  0x1a   :  { %s352_s14 = scalar_lea.vmem %s478_s21, 2048  ;;  %p357_p12 = scmp.lt.s32.totalorder %s478_s21, %s478_s21 }
  0x1b   :  { %p353_p11 = scmp.ne.s32.totalorder %s478_s21, %s352_s14  ;;  %p358_p13 = scmp.lt.s32.totalorder %s352_s14, %s352_s14 }
  0x1d   :  { %p359_p0 = por %p358_p13, %p357_p12 }
  0x1f   :  { %p360_p1 = pnand %p359_p0, %p353_p11 }
  0x21   :  { %363 = shalt.err (!%p360_p1)
}
  0x22   :  { %s440_s0 = smov 128   ;;  %s441_s15 = smov 8  }
  0x23   :  { %36 = dma.hbm_to_vmem [thread:$0]  %s549_s1, 2048, %s478_s21, [#allocation6], %s440_s0, %s440_s0, %s441_s15  }
  0x24   :  { %430 = dma.done.wait [#allocation3], 128  }
  0x25   :  { %431 = vsyncadd [#allocation3], 4294967168 }
  0x26   :  { %432 = dma.done.wait [#allocation6], 2048  }
  0x27   :  { %433 = vsyncadd [#allocation6], 4294965248  ;;  %v442_v0 = vmov 0.0|0.0   ;;  %vm443_vm0 = vmmov 0   ;;  %v444_v1 = vmov 0.0   ;;  %v46_v2 = vld [vmem:[#allocation5] sm:$0xff] }
  0x28   :  { %284 = vmatprep.subr.bf16.mxu0 %v442_v0  ;;  %281 = vmatprep.mubr.msk.f32.mxu0 %vm443_vm0, %v444_v1  ;;  %166 = vst [vmem:[#allocation8] sm:$0x1] %v444_v1  ;;  %167 = vst [vmem:[#allocation10] sm:$0x1] %v444_v1  ;;  %v47_v3 = vld [vmem:[#allocation5 + $0x8] sm:$0xff]  ;;  %v48_v4 = vld [vmem:[#allocation5 + $0x10] sm:$0xff] }
  0x29   :  { %v285_v5 = vpack.c.bf16 %v47_v3, %v46_v2  ;;  %v49_v6 = vld [vmem:[#allocation5 + $0x18] sm:$0xff]  ;;  %v50_v8 = vld [vmem:[#allocation5 + $0x20] sm:$0xff]  ;;  %v51_v9 = vld [vmem:[#allocation5 + $0x28] sm:$0xff]  ;;  %s445_s19 = smov [#allocation7]  }
  0x2a   :  { %v288_v7 = vpack.c.bf16 %v49_v6, %v48_v4  ;;  %v291_v10 = vpack.c.bf16 %v51_v9, %v50_v8  ;;  %v52_v11 = vld [vmem:[#allocation5 + $0x30] sm:$0xff]  ;;  %v53_v12 = vld [vmem:[#allocation5 + $0x38] sm:$0xff]  ;;  %v54_v14 = vld [vmem:[#allocation5 + $0x40] sm:$0xff]  ;;  %s194_s20 = sshll.u32 %s445_s19, 4  ;;  %s195_s20 = int_to_ptr.vmem [resolvable:$true] %s194_s20 }
  0x2b   :  { %286 = vmatpush3.bf16.msra.mxu0 %v285_v5  ;;  %v294_v13 = vpack.c.bf16 %v53_v12, %v52_v11  ;;  %v55_v15 = vld [vmem:[#allocation5 + $0x48] sm:$0xff]  ;;  %v56_v17 = vld [vmem:[#allocation5 + $0x50] sm:$0xff]  ;;  %v57_v18 = vld [vmem:[#allocation5 + $0x58] sm:$0xff]  ;;  %s364_s21 = scalar_lea.vmem %s195_s20, 128  ;;  %p369_p3 = scmp.lt.s32.totalorder %s195_s20, %s195_s20 }
  0x2c   :  { %287 = vmatprep.subr.bf16.mxu0 %v442_v0  ;;  %v297_v16 = vpack.c.bf16 %v55_v15, %v54_v14  ;;  %v300_v19 = vpack.c.bf16 %v57_v18, %v56_v17  ;;  %v58_v20 = vld [vmem:[#allocation5 + $0x60] sm:$0xff]  ;;  %v59_v21 = vld [vmem:[#allocation5 + $0x68] sm:$0xff]  ;;  %v60_v23 = vld [vmem:[#allocation5 + $0x70] sm:$0xff]  ;;  %p365_p2 = scmp.ne.s32.totalorder %s195_s20, %s364_s21  ;;  %p370_p4 = scmp.lt.s32.totalorder %s364_s21, %s364_s21 }
  0x2d   :  { %v303_v22 = vpack.c.bf16 %v59_v21, %v58_v20  ;;  %v61_v24 = vld [vmem:[#allocation5 + $0x78] sm:$0xff] }
  0x2e   :  { %v306_v25 = vpack.c.bf16 %v61_v24, %v60_v23  ;;  %v45_v26 = vld [vmem:[#allocation2] sm:$0xff]  ;;  %p371_p5 = por %p370_p4, %p369_p3 }
  0x2f   :  { %289 = vmatpush3.bf16.msra.mxu0 %v288_v7  ;;  %v231_v27 = vld [vmem:[%s550_s2] ss:$0 sm:$0xff] }
  0x30   :  { %290 = vmatprep.subr.bf16.mxu0 %v442_v0  ;;  %p372_p6 = pnand %p371_p5, %p365_p2 }
  0x33   :  { %292 = vmatpush3.bf16.msra.mxu0 %v291_v10 }
  0x34   :  { %293 = vmatprep.subr.bf16.mxu0 %v442_v0 }
  0x37   :  { %295 = vmatpush3.bf16.msra.mxu0 %v294_v13 }
  0x38   :  { %296 = vmatprep.subr.bf16.mxu0 %v442_v0 }
  0x3b   :  { %298 = vmatpush3.bf16.msra.mxu0 %v297_v16 }
  0x3c   :  { %299 = vmatprep.subr.bf16.mxu0 %v442_v0 }
  0x3f   :  { %301 = vmatpush3.bf16.msra.mxu0 %v300_v19 }
  0x40   :  { %302 = vmatprep.subr.bf16.mxu0 %v442_v0 }
  0x43   :  { %304 = vmatpush3.bf16.msra.mxu0 %v303_v22 }
  0x44   :  { %305 = vmatprep.subr.bf16.mxu0 %v442_v0 }
  0x47   :  { %307 = vmatpush3.bf16.msra.mxu0 %v306_v25 }
  0x4a   :  { %282 = vmatmul.mubr.f32.vlgmr.msra.gmra.mrb[0].mxu0 %v45_v26 }
 0x11d   :  { %v135_v28 = vpop.f32.mrb[0].mxu0 }
 0x11e   :  { %v136_v29 = vadd.f32 %v231_v27, %v135_v28  ;;  %v283_v30 = vpop.f32.mrb[1].mxu0 }
 0x120   :  { %v149_v31 = vrot.slane %v136_v29, 4  ;;  %v155_v32 = vmul.f32 %v136_v29, %v136_v29  ;;  %139 = vst [vmem:[#allocation7] sm:$0xff] %v136_v29 }
 0x121   :  { %375 = shalt.err (!%p372_p6)
}
 0x122   :  { %s376_s2 = scalar_lea.hbm %s551_s3, 128 }
 0x123   :  { %p377_p7 = scmp.ne.s32.totalorder %s551_s3, %s376_s2  ;;  %p380_p8 = scmp.lt.u32.totalorder %s376_s2, %s551_s3 }
 0x125   :  { %p382_p9 = pnand %p380_p8, %p377_p7 }
 0x127   :  { %385 = shalt.err (!%p382_p9)
}
 0x128   :  { %197 = dma.vmem_to_hbm [thread:$0]  %s195_s20, 128, %s551_s3, [#allocation4]   ;;  %v150_v33 = vadd.f32 %v149_v31, %v136_v29  ;;  %v156_v34 = vrot.slane %v155_v32, 4  ;;  %v168_v41 = vld [vmem:[#allocation8] sm:$0x1] }
 0x129   :  { %v171_v44 = vld [vmem:[#allocation10] sm:$0x1]  ;;  %s446_s30 = smov [#allocation8]  }
 0x12a   :  { %v151_v35 = vrot.slane %v150_v33, 2  ;;  %v157_v36 = vadd.f32 %v156_v34, %v155_v32  ;;  %s204_s6 = sshll.u32 %s446_s30, 4  ;;  %s205_s6 = int_to_ptr.vmem [resolvable:$true] %s204_s6 }
 0x12b   :  { %s386_s3 = scalar_lea.vmem %s205_s6, 16  ;;  %s390_s7 = scalar_lea.vmem %s205_s6, 32 }
 0x12c   :  { %v152_v37 = vadd.f32 %v151_v35, %v150_v33  ;;  %v158_v38 = vrot.slane %v157_v36, 2  ;;  %p387_p10 = scmp.ne.s32.totalorder %s205_s6, %s386_s3  ;;  %p391_p11 = scmp.lt.s32.totalorder %s205_s6, %s205_s6 }
 0x12d   :  { %p392_p12 = scmp.lt.s32.totalorder %s390_s7, %s386_s3 }
 0x12e   :  { %v153_v39 = vrot.slane %v152_v37, 1  ;;  %v159_v40 = vadd.f32 %v158_v38, %v157_v36 }
 0x12f   :  { %p393_p13 = por %p392_p12, %p391_p11 }
 0x130   :  { %v160_v42 = vrot.slane %v159_v40, 1  ;;  %v154_v43 = vadd.f32 %v153_v39, %v152_v37 }
 0x131   :  { %p394_p0 = pnand %p393_p13, %p387_p10 }
 0x132   :  { %v169_v45 = vadd.f32 %v168_v41, %v154_v43  ;;  %v161_v46 = vadd.f32 %v160_v42, %v159_v40 }
 0x134   :  { %170 = vst [vmem:[#allocation8] sm:$0x1] %v169_v45  ;;  %v172_v47 = vadd.f32 %v171_v44, %v161_v46 }
 0x136   :  { %173 = vst [vmem:[#allocation10] sm:$0x1] %v172_v47 }
 0x13b   :  { %v177_v48 = vld [vmem:[#allocation8] sm:$0x1] }
 0x13c   :  { %v178_v49 = vmul.f32 0.125, %v177_v48 }
 0x13d   :  { %v179_v50 = vld [vmem:[#allocation10] sm:$0x1] }
 0x13e   :  { %v181_v51 = vmul.f32 %v178_v49, %v178_v49  ;;  %184 = vst [vmem:[#allocation8] sm:$0x1] %v178_v49  ;;  %v180_v52 = vmul.f32 0.125, %v179_v50 }
 0x13f   :  { %397 = shalt.err (!%p394_p0)
}
 0x140   :  { %s398_s10 = scalar_lea.hbm %s552_s4, 16 }
 0x141   :  { %p399_p1 = scmp.ne.s32.totalorder %s552_s4, %s398_s10  ;;  %p402_p2 = scmp.lt.u32.totalorder %s398_s10, %s552_s4 }
 0x143   :  { %p404_p3 = pnand %p402_p2, %p399_p1 }
 0x145   :  { %407 = shalt.err (!%p404_p3)
}
 0x146   :  { %207 = dma.vmem_to_hbm [thread:$0]  %s205_s6, 16, %s552_s4, [#allocation9]   ;;  %v182_v53 = vsub.f32 %v180_v52, %v181_v51 }
 0x147   :  { %s447_s16 = smov [#allocation10]  }
 0x148   :  { %v183_v54 = vmax.f32 %v182_v53, 0.0  ;;  %s214_s17 = sshll.u32 %s447_s16, 4  ;;  %s215_s17 = int_to_ptr.vmem [resolvable:$true] %s214_s17 }
 0x149   :  { %s408_s1 = scalar_lea.vmem %s215_s17, 16  ;;  %s412_s18 = scalar_lea.vmem %s215_s17, 32 }
 0x14a   :  { %v185_v55 = vadd.f32 1e-05, %v183_v54  ;;  %p409_p4 = scmp.ne.s32.totalorder %s215_s17, %s408_s1  ;;  %p413_p5 = scmp.lt.s32.totalorder %s215_s17, %s215_s17 }
 0x14b   :  { %p414_p6 = scmp.lt.s32.totalorder %s412_s18, %s408_s1 }
 0x14c   :  { %318 = vrsqrt.f32 %v185_v55 }
 0x14d   :  { %p415_p7 = por %p414_p6, %p413_p5 }
 0x14f   :  { %p416_p8 = pnand %p415_p7, %p409_p4 }
 0x156   :  { %v319_v56 = vpop.eup %318 }
 0x157   :  { %187 = vst [vmem:[#allocation10] sm:$0x1] %v319_v56 }
 0x158   :  { %419 = shalt.err (!%p416_p8)
}
 0x159   :  { %s420_s4 = scalar_lea.hbm %s553_s5, 16 }
 0x15a   :  { %p421_p9 = scmp.ne.s32.totalorder %s553_s5, %s420_s4  ;;  %p424_p10 = scmp.lt.u32.totalorder %s420_s4, %s553_s5 }
 0x15c   :  { %p426_p11 = pnand %p424_p10, %p421_p9 }
 0x15e   :  { %429 = shalt.err (!%p426_p11)
}
 0x15f   :  { %217 = dma.vmem_to_hbm [thread:$0]  %s215_s17, 16, %s553_s5, [#allocation9]  }
 0x160   :  { %434 = dma.done.wait [#allocation4], 128  }
 0x161   :  { %435 = vsyncadd [#allocation4], 4294967168 }
 0x162   :  { %436 = dma.done.wait [#allocation9], 32  }
 0x163   :  { %437 = vsyncadd [#allocation9], 4294967264 }
 0x164   :  { %227 = vsyncpa [#allocation3], 1 }
 0x165   :  { %228 = vsyncpa [#allocation6], 1 }
 0x166   :  { %229 = vsyncpa [#allocation4], 1 }
 0x167   :  { %230 = vsyncpa [#allocation9], 1 }

</bundles_post_ra>
